<compile_context>
chip_gen: v7x
topology: tpu7x:2x2x1
jax: 0.10.0
libtpu: 0.0.40
codegen_flags: <defaults>
</compile_context>

<pallas_src>
import functools

import jax
import jax.numpy as jnp
from jax.experimental import pallas as pl
from jax.experimental.pallas import tpu as pltpu

LANES = 128
SUBLANES = 8
MAX_BLOCK_ROWS = 2048  # 2048x128xf32 = 1 MiB/buffer; 2 inputs x 2 bufs = ~4 MiB VMEM


def _round_up(x, m):
    return ((x + m - 1) // m) * m


def _cdiv(a, b):
    return (a + b - 1) // b


def _bce_blur_kernel(pred_ref, true_ref, out_ref, *,
                     inv_alpha, n_body, block_rows, half_blocks,
                     bf16_transcendentals):
    c = pl.program_id(0)   # "parallel" split -> one partial sum per half (2 TCs on v7x)
    i = pl.program_id(1)   # "arbitrary" running-sum axis

    @pl.when(i == 0)
    def _():
        out_ref[...] = jnp.zeros_like(out_ref)

    x = pred_ref[...].astype(jnp.float32)
    y = true_ref[...].astype(jnp.float32)

    if bf16_transcendentals:
        # bf16 EUP throughput is ~2x f32 on v6e/v7x; keep accumulation in f32.
        # Do not enable on v5e (no bf16 EUP/VPU).
        _exp = lambda v: jnp.exp(v.astype(jnp.bfloat16)).astype(jnp.float32)
        _log1p = lambda v: jnp.log1p(v.astype(jnp.bfloat16)).astype(jnp.float32)
    else:
        _exp, _log1p = jnp.exp, jnp.log1p

    # Numerically stable BCE-with-logits, sharing one exp(-|x|) between the log
    # term and the sigmoid:
    #   bce        = max(x, 0) - x*y + log1p(exp(-|x|))
    #   sigmoid(x) = r        if x >= 0 else e*r,   e = exp(-|x|), r = 1/(1+e)
    e = _exp(-jnp.abs(x))
    bce = jnp.maximum(x, 0.0) - x * y + _log1p(e)
    # Approx EUP reciprocal: one push instead of reciprocal + Newton refinement.
    r = pl.reciprocal(1.0 + e, approx=True)
    p = jnp.where(x >= 0.0, r, e * r)
    dx = p - y
    alpha_factor = 1.0 - _exp((dx - 1.0) * inv_alpha)
    loss = bce * alpha_factor

    # Only blocks that reach past the last valid body element need masking;
    # interior blocks skip the iota/compare/select work entirely.
    block_elems = block_rows * LANES
    blk = c * half_blocks + i          # logical (unclamped) block id
    start = blk * block_elems          # int32: n_body asserted < 2**31 in wrapper
    is_tail = start + block_elems > n_body

    @pl.when(jnp.logical_not(is_tail))
    def _():
        out_ref[...] += jnp.sum(loss, axis=0, keepdims=True)

    @pl.when(is_tail)
    def _():
        row_ids = jax.lax.broadcasted_iota(jnp.int32, loss.shape, 0)
        col_ids = jax.lax.broadcasted_iota(jnp.int32, loss.shape, 1)
        flat = start + row_ids * LANES + col_ids
        # Select (not multiply) so garbage rows of a ragged / duplicated block
        # cannot propagate NaN/Inf into the accumulator.
        out_ref[...] += jnp.sum(jnp.where(flat < n_body, loss, 0.0),
                                axis=0, keepdims=True)


def _loss_elems_f32(x, y, inv_alpha):
    """Plain-JAX per-element loss (used only for the <128-element remainder)."""
    x = x.astype(jnp.float32)
    y = y.astype(jnp.float32)
    e = jnp.exp(-jnp.abs(x))
    bce = jnp.maximum(x, 0.0) - x * y + jnp.log1p(e)
    p = jnp.where(x >= 0.0, 1.0, e) / (1.0 + e)
    dx = p - y
    return bce * (1.0 - jnp.exp((dx - 1.0) * inv_alpha))


def bce_blur_with_logits_loss(pred, true, alpha=0.05, bf16_transcendentals=False):
    """Mean BCEBlurWithLogitsLoss over all elements of pred/true."""
    assert pred.shape == true.shape
    n_valid = int(pred.size)
    assert n_valid > 0
    # Kernel tail-mask flat indexing is int32.
    assert n_valid < 2**31, "tensor too large for int32 tail-mask indexing"

    inv_alpha = 1.0 / (float(alpha) + 1e-4)

    pred_f = pred.reshape(-1)
    true_f = true.reshape(-1)

    rows = n_valid // LANES
    n_body = rows * LANES
    rem = n_valid - n_body

    # <128-element remainder: tiny plain-JAX sum instead of an O(N) pad copy.
    tail_sum = jnp.float32(0.0)
    if rem:
        tail_sum = jnp.sum(_loss_elems_f32(pred_f[n_body:], true_f[n_body:], inv_alpha))

    if rows == 0:
        return tail_sum / jnp.float32(n_valid)

    pred_2d = pred_f[:n_body].reshape(rows, LANES)
    true_2d = true_f[:n_body].reshape(rows, LANES)

    # Aim for >=2 row blocks so the size-2 "parallel" axis can cover both v7x
    # TensorCores even on small/medium tensors (harmless on 1-TC v5e/v6e).
    block_rows = min(MAX_BLOCK_ROWS, _round_up(max(_cdiv(rows, 2), 1), SUBLANES))
    num_row_blocks = _cdiv(rows, block_rows)

    n_split = 2 if num_row_blocks >= 2 else 1
    half_blocks = _cdiv(num_row_blocks, n_split)

    def in_map(c, i):
        # Clamp so a duplicate trailing block of the second half never issues a
        # fully out-of-bounds DMA; its contribution is masked to zero in-kernel.
        return (jnp.minimum(c * half_blocks + i, num_row_blocks - 1), 0)

    kernel = functools.partial(
        _bce_blur_kernel,
        inv_alpha=inv_alpha,
        n_body=int(n_body),
        block_rows=int(block_rows),
        half_blocks=int(half_blocks),
        bf16_transcendentals=bool(bf16_transcendentals),
    )

    partial_sums = pl.pallas_call(
        kernel,
        out_shape=jax.ShapeDtypeStruct((1, n_split * LANES), jnp.float32),
        grid_spec=pltpu.PrefetchScalarGridSpec(
            num_scalar_prefetch=0,
            grid=(n_split, half_blocks),
            in_specs=[
                pl.BlockSpec((block_rows, LANES), in_map),
                pl.BlockSpec((block_rows, LANES), in_map),
            ],
            out_specs=pl.BlockSpec((1, LANES), lambda c, i: (0, c)),
        ),
        compiler_params=pltpu.CompilerParams(
            # NOTE: if profiling shows a 2-long "parallel" axis is not sharded
            # across v7x TCs, switch the first axis to pltpu.CORE_PARALLEL.
            dimension_semantics=("parallel", "arbitrary"),
        ),
    )(pred_2d, true_2d)

    return (jnp.sum(partial_sums) + tail_sum) / jnp.float32(n_valid)


def _reference(pred, true, alpha=0.05):
    x = pred.astype(jnp.float32)
    y = true.astype(jnp.float32)
    bce = jnp.maximum(x, 0.0) - x * y + jnp.log1p(jnp.exp(-jnp.abs(x)))
    p = jax.nn.sigmoid(x)
    dx = p - y
    af = 1.0 - jnp.exp((dx - 1.0) / (alpha + 0.0001))
    return jnp.mean(bce * af)


if __name__ == "__main__":
    key = jax.random.PRNGKey(0)
    k1, k2 = jax.random.split(key)
    # Small NCHW-shaped logits/targets, consistent with YOLOv5 usage.
    pred = jax.random.normal(k1, (2, 4, 16, 16), dtype=jnp.float32)
    true = (jax.random.uniform(k2, (2, 4, 16, 16)) > 0.5).astype(jnp.float32)

    loss = bce_blur_with_logits_loss(pred, true, alpha=0.05)
    jax.block_until_ready(loss)

    ref = _reference(pred, true, alpha=0.05)
    # approx EUP reciprocal intentionally perturbs numerics slightly -> rtol 1e-3.
    assert jnp.allclose(loss, ref, rtol=1e-3, atol=1e-6), (loss, ref)
    print("KERNEL_OK")
</pallas_src>

<mosaic_0001>
module attributes {stable_mosaic.version = 11 : i64} {
  func.func @_bce_blur_kernel(%arg0: i32, %arg1: i32, %arg2: memref<8x128xf32, #tpu.memory_space<vmem>>, %arg3: memref<8x128xf32, #tpu.memory_space<vmem>>, %arg4: memref<1x128xf32, #tpu.memory_space<vmem>>) attributes {dimension_semantics = [#tpu.dimension_semantics<parallel>, #tpu.dimension_semantics<arbitrary>], iteration_bounds = array<i64: 2, 1>, scalar_prefetch = 0 : i64, scratch_operands = 0 : i64, tpu.core_type = #tpu.core_type<tc>, window_params = [{transform_indices = @transform_0, window_bounds = array<i64: 8, 128>}, {transform_indices = @transform_1, window_bounds = array<i64: 8, 128>}, {transform_indices = @transform_2, window_bounds = array<i64: 1, 128>}]} {
    %c0_i32 = arith.constant 0 : i32
    %0 = arith.cmpi eq, %arg1, %c0_i32 : i32
    %1 = arith.extui %0 : i1 to i32
    %c0_i32_0 = arith.constant 0 : i32
    %2 = arith.cmpi ne, %1, %c0_i32_0 : i32
    scf.if %2 {
      %cst_13 = arith.constant 0.000000e+00 : f32
      %41 = vector.broadcast %cst_13 : f32 to vector<1x128xf32>
      %c0_14 = arith.constant 0 : index
      %c0_15 = arith.constant 0 : index
      %42 = vector.load %arg4[%c0_14, %c0_15] : memref<1x128xf32, #tpu.memory_space<vmem>>, vector<1x128xf32>
      tpu.vector_store %arg4[%c0_14, %c0_15], %41 {strides = array<i32>} : memref<1x128xf32, #tpu.memory_space<vmem>>, vector<1x128xf32>,
    } else {
    }
    %c0 = arith.constant 0 : index
    %c0_1 = arith.constant 0 : index
    %3 = vector.load %arg2[%c0, %c0_1] : memref<8x128xf32, #tpu.memory_space<vmem>>, vector<8x128xf32>
    %c0_2 = arith.constant 0 : index
    %c0_3 = arith.constant 0 : index
    %4 = vector.load %arg3[%c0_2, %c0_3] : memref<8x128xf32, #tpu.memory_space<vmem>>, vector<8x128xf32>
    %5 = math.absf %3 : vector<8x128xf32>
    %cst = arith.constant 0.000000e+00 : f32
    %6 = vector.broadcast %cst : f32 to vector<8x128xf32>
    %7 = arith.subf %6, %5 : vector<8x128xf32>
    %8 = math.exp %7 : vector<8x128xf32>
    %cst_4 = arith.constant 0.000000e+00 : f32
    %9 = vector.broadcast %cst_4 : f32 to vector<8x128xf32>
    %10 = arith.maximumf %3, %9 : vector<8x128xf32>
    %11 = arith.mulf %3, %4 : vector<8x128xf32>
    %12 = arith.subf %10, %11 : vector<8x128xf32>
    %13 = math.log1p %8 : vector<8x128xf32>
    %14 = arith.addf %12, %13 : vector<8x128xf32>
    %cst_5 = arith.constant 1.000000e+00 : f32
    %15 = vector.broadcast %cst_5 : f32 to vector<8x128xf32>
    %16 = arith.addf %15, %8 : vector<8x128xf32>
    %17 = tpu.reciprocal %16 {approx = true} : vector<8x128xf32> -> vector<8x128xf32>
    %cst_6 = arith.constant 0.000000e+00 : f32
    %18 = vector.broadcast %cst_6 : f32 to vector<8x128xf32>
    %19 = arith.cmpf oge, %3, %18 : vector<8x128xf32>
    %20 = arith.mulf %8, %17 : vector<8x128xf32>
    %21 = arith.select %19, %17, %20 : vector<8x128xi1>, vector<8x128xf32>
    %22 = arith.subf %21, %4 : vector<8x128xf32>
    %cst_7 = arith.constant 1.000000e+00 : f32
    %23 = vector.broadcast %cst_7 : f32 to vector<8x128xf32>
    %24 = arith.subf %22, %23 : vector<8x128xf32>
    %cst_8 = arith.constant 19.9600792 : f32
    %25 = vector.broadcast %cst_8 : f32 to vector<8x128xf32>
    %26 = arith.mulf %24, %25 : vector<8x128xf32>
    %27 = math.exp %26 : vector<8x128xf32>
    %cst_9 = arith.constant 1.000000e+00 : f32
    %28 = vector.broadcast %cst_9 : f32 to vector<8x128xf32>
    %29 = arith.subf %28, %27 : vector<8x128xf32>
    %30 = arith.mulf %14, %29 : vector<8x128xf32>
    %c1_i32 = arith.constant 1 : i32
    %31 = arith.muli %arg0, %c1_i32 : i32
    %32 = arith.addi %31, %arg1 : i32
    %c1024_i32 = arith.constant 1024 : i32
    %33 = arith.muli %32, %c1024_i32 : i32
    %c1024_i32_10 = arith.constant 1024 : i32
    %34 = arith.addi %33, %c1024_i32_10 : i32
    %c2048_i32 = arith.constant 2048 : i32
    %35 = arith.cmpi sgt, %34, %c2048_i32 : i32
    %true = arith.constant true
    %36 = arith.xori %35, %true : i1
    %37 = arith.extui %36 : i1 to i32
    %c0_i32_11 = arith.constant 0 : i32
    %38 = arith.cmpi ne, %37, %c0_i32_11 : i32
    scf.if %38 {
      %c0_13 = arith.constant 0 : index
      %c0_14 = arith.constant 0 : index
      %41 = vector.load %arg4[%c0_13, %c0_14] : memref<1x128xf32, #tpu.memory_space<vmem>>, vector<1x128xf32>
      %cst_15 = arith.constant dense<0.000000e+00> : vector<128xf32>
      %42 = vector.multi_reduction <add>, %30, %cst_15 [0] : vector<8x128xf32> to vector<128xf32>
      %43 = vector.shape_cast %42 : vector<128xf32> to vector<1x128xf32>
      %44 = arith.addf %41, %43 : vector<1x128xf32>
      %c0_16 = arith.constant 0 : index
      %c0_17 = arith.constant 0 : index
      %45 = vector.load %arg4[%c0_16, %c0_17] : memref<1x128xf32, #tpu.memory_space<vmem>>, vector<1x128xf32>
      tpu.vector_store %arg4[%c0_16, %c0_17], %44 {strides = array<i32>} : memref<1x128xf32, #tpu.memory_space<vmem>>, vector<1x128xf32>,
    } else {
    }
    %39 = arith.extui %35 : i1 to i32
    %c0_i32_12 = arith.constant 0 : i32
    %40 = arith.cmpi ne, %39, %c0_i32_12 : i32
    scf.if %40 {
      %41 = tpu.iota {dimensions = array<i32: 0>} : vector<8x128xi32>
      %42 = tpu.iota {dimensions = array<i32: 1>} : vector<8x128xi32>
      %c128_i32 = arith.constant 128 : i32
      %43 = vector.broadcast %c128_i32 : i32 to vector<8x128xi32>
      %44 = arith.muli %41, %43 : vector<8x128xi32>
      %45 = vector.broadcast %33 : i32 to vector<8x128xi32>
      %46 = arith.addi %45, %44 : vector<8x128xi32>
      %47 = arith.addi %46, %42 : vector<8x128xi32>
      %c0_13 = arith.constant 0 : index
      %c0_14 = arith.constant 0 : index
      %48 = vector.load %arg4[%c0_13, %c0_14] : memref<1x128xf32, #tpu.memory_space<vmem>>, vector<1x128xf32>
      %c2048_i32_15 = arith.constant 2048 : i32
      %49 = vector.broadcast %c2048_i32_15 : i32 to vector<8x128xi32>
      %50 = arith.cmpi slt, %47, %49 : vector<8x128xi32>
      %cst_16 = arith.constant 0.000000e+00 : f32
      %51 = vector.broadcast %cst_16 : f32 to vector<8x128xf32>
      %52 = arith.select %50, %30, %51 : vector<8x128xi1>, vector<8x128xf32>
      %cst_17 = arith.constant dense<0.000000e+00> : vector<128xf32>
      %53 = vector.multi_reduction <add>, %52, %cst_17 [0] : vector<8x128xf32> to vector<128xf32>
      %54 = vector.shape_cast %53 : vector<128xf32> to vector<1x128xf32>
      %55 = arith.addf %48, %54 : vector<1x128xf32>
      %c0_18 = arith.constant 0 : index
      %c0_19 = arith.constant 0 : index
      %56 = vector.load %arg4[%c0_18, %c0_19] : memref<1x128xf32, #tpu.memory_space<vmem>>, vector<1x128xf32>
      tpu.vector_store %arg4[%c0_18, %c0_19], %55 {strides = array<i32>} : memref<1x128xf32, #tpu.memory_space<vmem>>, vector<1x128xf32>,
    } else {
    }
    return
  }
  func.func @transform_0(%arg0: i32, %arg1: i32) -> (i32, i32) {
    %c1_i32 = arith.constant 1 : i32
    %0 = arith.muli %arg0, %c1_i32 : i32
    %1 = arith.addi %0, %arg1 : i32
    %c1_i32_0 = arith.constant 1 : i32
    %2 = arith.minsi %1, %c1_i32_0 : i32
    %c0_i32 = arith.constant 0 : i32
    %c0_i32_1 = arith.constant 0 : i32
    return %2, %c0_i32 : i32, i32
  }
  func.func @transform_1(%arg0: i32, %arg1: i32) -> (i32, i32) {
    %c1_i32 = arith.constant 1 : i32
    %0 = arith.muli %arg0, %c1_i32 : i32
    %1 = arith.addi %0, %arg1 : i32
    %c1_i32_0 = arith.constant 1 : i32
    %2 = arith.minsi %1, %c1_i32_0 : i32
    %c0_i32 = arith.constant 0 : i32
    %c0_i32_1 = arith.constant 0 : i32
    return %2, %c0_i32 : i32, i32
  }
  func.func @transform_2(%arg0: i32, %arg1: i32) -> (i32, i32) {
    %c0_i32 = arith.constant 0 : i32
    %c0_i32_0 = arith.constant 0 : i32
    return %c0_i32, %arg0 : i32, i32
  }
}

</mosaic_0001>

<bundles_post_ra>
// kernel: tpu_custom_call.1
= control target key start
LH: loop header
LB: loop body
LE: loop exit
PB: predicated region body
PF: predicated region fallthrough
CT: control target
= control target key end

     0   :  { %7 = vsyncpa [#allocation3], 0  ;;  %s991_s0 = inlined_call_operand.hbm [shape: f32[16,128], index: 0, kind: input, shape index: {}]   ;;  %s992_s1 = inlined_call_operand.hbm [shape: f32[16,128], index: 1, kind: input, shape index: {}]   ;;  %s993_s2 = inlined_call_operand.hbm [shape: f32[1,256], index: 2, kind: output, shape index: {}]  }
   0x1   :  { %9 = vsyncpa [#allocation3 + $0x1], 0 }
   0x2   :  { %10 = vsyncpa [#allocation6], 0 }
   0x3   :  { %12 = vsyncpa [#allocation6 + $0x1], 0 }
   0x4   :  { %13 = vsyncpa [#allocation4], 0 }
   0x5   :  { %15 = vsyncpa [#allocation4 + $0x1], 0  ;;  %s725_s9 = smov 0   ;;  %s727_s10 = smov 0  }
   0x6   :  { %s729_s11 = smov 0   ;;  %s731_s12 = smov 0  }
   0x7   :  { %s733_s13 = smov 0   ;;  %s735_s14 = smov 0  }
   0x8   :  { %s737_s15 = smov 0   ;;  %s739_s16 = smov 0  }
   0x9   :  { %s741_s17 = smov 0  }
   0xa LB: > { %s416_s18 = sadd.s32 4294967295, %s704_s17   ;;  %s417_s19 = sadd.s32 4294967294, %s704_s17   ;;  %s704_s17 = sphi %s741_s17, %s21_s17   ;;  %s700_s16 = sphi %s739_s16, %s1018_s16   ;;  %s696_s15 = sphi %s737_s15, %s1017_s15   ;;  %s692_s14 = sphi %s735_s14, %s1016_s14   ;;  %s688_s13 = sphi %s733_s13, %s1015_s13   ;;  %s684_s12 = sphi %s731_s12, %s1014_s12   ;;  %s680_s11 = sphi %s729_s11, %s1013_s11   ;;  %s676_s10 = sphi %s727_s10, %s1012_s10   ;;  %s672_s9 = sphi %s725_s9, %s1011_s9  }
   0xb   : > { %s33_s20 = sadd.s32 1, %s700_s16  ;;  %p38_p0 = scmp.lt.s32.totalorder %s700_s16, 1 }
   0xc   : > { %p35_p1 = scmp.ge.s32.totalorder %s33_s20, 2  ;;  %s46_s21 = sadd.s32 1, %s692_s14 }
   0xd   : > { %s774_s22 = scalar_select %p38_p0, %s700_s16, 1 }
   0xe   : > { %s1020_s20 = smov (%p35_p1, %s33_s20), 0  ;;  %p53_p2 = scmp.ne.s32.totalorder %s692_s14, %s688_s13 }
   0xf   : > { %p54_p3 = scmp.eq.s32.totalorder %s704_s17, 0  ;;  %p41_p4 = scmp.lt.s32.totalorder %s1020_s20, 1 }
  0x10   : > { %p59_p5 = scmp.ne.s32.totalorder %s688_s13, %s684_s12  ;;  %p60_p7 = scmp.eq.s32.totalorder %s416_s18, 0 }
  0x11   : > { %p783_p6 = por %p54_p3, %p53_p2  ;;  %s101_s26 = ssub.s32 %s700_s16, %s1020_s20 }
  0x12   : > { %s42_s24 = scalar_select %p41_p4, %s1020_s20, 1 }
  0x13   : > { %p788_p8 = por %p60_p7, %p59_p5  ;;  %p102_p9 = scmp.eq.s32.totalorder %s101_s26, 0 }
  0x14   : > { %s43_s27 = ssub.s32 %s774_s22, %s42_s24  ;;  %s104_s28 = sadd.s32 1, %s680_s11 }
  0x15   : > { %s998_s25 = scalar_select %p788_p8, 1, 0 }
  0x16   : > { %p44_p10 = scmp.eq.s32.totalorder %s43_s27, 0  ;;  %p114_p11 = scmp.ne.s32.totalorder %s680_s11, %s676_s10 }
  0x17   : > { %s797_s29 = scalar_select %p102_p9, %s680_s11, %s104_s28  }
  0x18   : > { %s800_s30 = scalar_select %p44_p10, %s692_s14, %s46_s21  }
  0x19   : > { %p115_p12 = scmp.eq.s32.totalorder %s416_s18, 1  ;;  %p120_p13 = scmp.ne.s32.totalorder %s676_s10, %s672_s9 }
  0x1a   : > { %p121_p0 = scmp.eq.s32.totalorder %s417_s19, 1  ;;  %p451_p4 = scmp.lt.s32.totalorder %s704_s17, 2 }
  0x1b   : > { %p806_p1 = por %p115_p12, %p114_p11  ;;  %s817_s5 = sand.u32 1, %s692_s14  }
  0x1c   : > { %p811_p3 = por %p121_p0, %p120_p13  ;;  %s421_s6 = sshll.u32 %s774_s22, 7 }
  0x1d   : > { %s999_s3 = scalar_select %p806_p1, 1, 0 }
  0x1e   : > { %s1000_s4 = scalar_select %p811_p3, 1, 0 }
  0x1f   : > { %s994_s7 = sshll.u32 %s817_s5, 3  ;;  %s826_s18 = scalar_lea.hbm %s991_s0, %s421_s6 }
  0x20   : > { %s145_s19 = scalar_lea.vmem [#allocation2], %s994_s7  ;;  %p832_p5 = pnand %p451_p4, %p783_p6 }
  0x21   : > { %s155_s21 = sshll.u32 %s145_s19, 4  ;;  %s142_s26 = scalar_lea.sflag [#allocation3], %s817_s5  ;;  %s836_s21 = int_to_ptr.vmem [resolvable:$true] %s155_s21 }
  0x22   : > { %s534_s27 = scalar_lea.hbm %s826_s18, 128  ;;  %p536_p11 = pneg %p832_p5 }
  0x23   : > { %p535_p10 = scmp.ne.s32.totalorder %s826_s18, %s534_s27  ;;  %s539_s8 = scalar_lea.hbm %s991_s0, 256 }
  0x24   : > { %p540_p6 = scmp.lt.u32.totalorder %s826_s18, %s991_s0  ;;  %p541_p0 = scmp.lt.u32.totalorder %s539_s8, %s534_s27 }
  0x25   : > { %p537_p12 = pnand %p536_p11, %p535_p10  ;;  %p543_p2 = scmp.lt.u32.totalorder %s534_s27, %s826_s18 }
  0x26   : > { %p542_p4 = por %p541_p0, %p540_p6 }
  0x27   : > { %p538_p13 = pneg %p537_p12 }
  0x28   : > { %p544_p7 = por %p543_p2, %p542_p4 }
  0x2a   : > { %p545_p9 = pnand %p544_p7, %p538_p13 }
  0x2c   : > { %548 = shalt.err (!%p545_p9)
}
  0x2d   : > { %s549_s7 = scalar_lea.vmem %s836_s21, 128  ;;  %s706_s23 = smov [#allocation2]  }
  0x2e   : > { %p550_p10 = scmp.ne.s32.totalorder %s836_s21, %s549_s7  ;;  %s554_s28 = sshll.u32 %s706_s23, 4  ;;  %s555_s28 = int_to_ptr.vmem [resolvable:$false] %s554_s28 }
  0x2f   : > { %s556_s12 = scalar_lea.vmem %s555_s28, 256  ;;  %p557_p1 = scmp.lt.s32.totalorder %s836_s21, %s555_s28 }
  0x30   : > { %p552_p12 = pnand %p550_p10, %p536_p11  ;;  %p558_p6 = scmp.lt.s32.totalorder %s556_s12, %s549_s7 }
  0x32   : > { %p553_p3 = pneg %p552_p12  ;;  %p559_p0 = por %p558_p6, %p557_p1 }
  0x34   : > { %p560_p2 = pnand %p559_p0, %p553_p3 }
  0x36   : > { %563 = shalt.err (!%p560_p2)
}
  0x37   : > { %443 = dma.hbm_to_vmem [thread:$0]  (!%p832_p5), %s826_s18, 128, %s836_s21, %s142_s26  }
  0x38   : > { %p1002_p7 = scmp.lt.s32.totalorder %s704_s17, 3  ;;  %p1003_p9 = scmp.ge.s32.totalorder %s704_s17, 1 }
  0x39   : > { %s879_s19 = scalar_lea.hbm %s992_s1, %s421_s6  ;;  %s1005_s23 = sshll.u32 %s817_s5, 3 }
  0x3a   : > { %p870_p13 = pnand %p1003_p9, %p1002_p7  ;;  %s166_s28 = scalar_lea.vmem [#allocation5], %s1005_s23 }
  0x3b   : > { %s176_s12 = sshll.u32 %s166_s28, 4  ;;  %s163_s18 = scalar_lea.sflag [#allocation6], %s817_s5  ;;  %s177_s12 = int_to_ptr.vmem [resolvable:$true] %s176_s12 }
  0x3c   : > { %s1004_s27 = scalar_select %p870_p13, 1, 0 }
  0x3d   : > { %s564_s21 = scalar_lea.hbm %s879_s19, 128  ;;  %s569_s6 = scalar_lea.hbm %s992_s1, 256 }
  0x3e   : > { %p565_p1 = scmp.ne.s32.totalorder %s879_s19, %s564_s21  ;;  %p570_p10 = scmp.lt.u32.totalorder %s879_s19, %s992_s1 }
  0x3f   : > { %p571_p12 = scmp.lt.u32.totalorder %s569_s6, %s564_s21  ;;  %p573_p0 = scmp.lt.u32.totalorder %s564_s21, %s879_s19 }
  0x40   : > { %p567_p3 = pnand %p565_p1, %p536_p11 }
  0x41   : > { %p572_p6 = por %p571_p12, %p570_p10 }
  0x42   : > { %p568_p4 = pneg %p567_p3 }
  0x43   : > { %p574_p2 = por %p573_p0, %p572_p6 }
  0x45   : > { %p575_p7 = pnand %p574_p2, %p568_p4 }
  0x47   : > { %578 = shalt.err (!%p575_p7)
}
  0x48   : > { %s579_s5 = scalar_lea.vmem %s177_s12, 128  ;;  %s707_s23 = smov [#allocation5]  }
  0x49   : > { %p580_p9 = scmp.ne.s32.totalorder %s177_s12, %s579_s5  ;;  %s584_s28 = sshll.u32 %s707_s23, 4  ;;  %s585_s28 = int_to_ptr.vmem [resolvable:$false] %s584_s28 }
  0x4a   : > { %s586_s22 = scalar_lea.vmem %s585_s28, 256  ;;  %p587_p8 = scmp.lt.s32.totalorder %s177_s12, %s585_s28 }
  0x4b   : > { %p582_p1 = pnand %p580_p9, %p536_p11  ;;  %p588_p13 = scmp.lt.s32.totalorder %s586_s22, %s579_s5 }
  0x4d   : > { %p583_p3 = pneg %p582_p1  ;;  %p589_p10 = por %p588_p13, %p587_p8 }
  0x4f   : > { %p590_p12 = pnand %p589_p10, %p583_p3 }
  0x51   : > { %593 = shalt.err (!%p590_p12)
}
  0x52   : > { %446 = dma.hbm_to_vmem [thread:$0]  (!%p832_p5), %s879_s19, 128, %s177_s12, %s163_s18  }
  0x53   : > { %p1006_p4 = scmp.ne.s32.totalorder %s1004_s27, 0 }
  0x54   : > { %s187_s21 = sand.u32 (!%p1006_p4), 1, %s688_s13   ;;  %p1007_p11 = scmp.ne.s32.totalorder (!%p1006_p4), %s998_s25, 0 }
  0x55   : > { %185 = sbr.rel (%p1006_p4) target bundleno = 220 (0xdc), region = 28  ;;  %s425_s26 = sshll.u32 (!%p1006_p4), %s187_s21, 3 }
  0x56   : > { %s188_s6 = scalar_lea.sflag (!%p1006_p4), [#allocation3], %s187_s21  ;;  %s191_s7 = scalar_lea.vmem (!%p1006_p4), [#allocation2], %s425_s26 }
  0x5c   : > { %659 = dma.done.wait (%p1007_p11), %s188_s6, 128  }
  0x5d   : > { %661 = vsyncadd (%p1007_p11), %s188_s6, 4294967168  ;;  %s197_s8 = scalar_lea.sflag [#allocation6], %s187_s21  ;;  %s200_s5 = scalar_lea.vmem [#allocation5], %s425_s26 }
  0x5e   : > { %663 = dma.done.wait (%p1007_p11), %s197_s8, 128  }
  0x5f   : > { %665 = vsyncadd (%p1007_p11), %s197_s8, 4294967168  ;;  %s223_s24 = sand.u32 1, %s676_s10   ;;  %s428_s27 = sshll.u32 %s696_s15, 10  ;;  %v708_v0 = vmov 0.0   ;;  %v236_v1 = vld [vmem:[%s191_s7] sm:$0xff]  ;;  %v237_v8 = vld [vmem:[%s200_s5] sm:$0xff] }
  0x60   : > { %s918_s19 = sadd.s32 1024, %s428_s27  ;;  %s922_s12 = scalar_lea.vmem [#allocation7], %s223_s24  ;;  %v238_v2 = vand.u32 2147483647, %v236_v1  ;;  %vm257_vm0 = vcmp.ge.f32.partialorder %v236_v1, 0.0  ;;  %v242_v19 = vmax.f32 %v236_v1, 0.0  ;;  %v243_v20 = vmul.f32 %v237_v8, %v236_v1 }
  0x61   : > { %235 = vst [vmem:[%s922_s12] sm:$0x1] %v708_v0  ;;  %p429_p8 = scmp.gt.s32.totalorder %s918_s19, 2048 }
  0x62   : > { %v239_v3 = vsub.f32 0.0, %v238_v2  ;;  %v244_v23 = vsub.f32 %v242_v19, %v243_v20 }
  0x64   : > { %v240_v4 = vmul.f32 1.442695, %v239_v3 }
  0x66   : > { %526 = vpow2.f32 %v240_v4 }
  0x68   : > { %v275_v34 = vld [vmem:[%s922_s12] sm:$0x1] (!%p429_p8) }
  0x70   : > { %v527_v5 = vpop.eup %526 }
  0x71   : > { %v245_v6 = vadd.f32 1.0, %v527_v5  ;;  %v248_v12 = vmul.f32 -0.5, %v527_v5  ;;  %v251_v18 = vand.u32 2147483647, %v527_v5 }
  0x73   : > { %528 = vrcp.f32 %v245_v6  ;;  %v249_v15 = vadd.f32 1.0, %v248_v12  ;;  %vm252_vm1 = vcmp.lt.f32.partialorder %v251_v18, 0.0004427343 }
  0x74   : > { %530 = vlog2.f32 %v245_v6 }
  0x75   : > { %v250_v22 = vmul.f32 %v527_v5, %v249_v15 }
  0x7d   : > { %v529_v7 = vpop.eup %528 }
  0x7e   : > { %v258_v9 = vmul.f32 %v529_v7, %v527_v5  ;;  %v531_v17 = vpop.eup %530 }
  0x7f   : > { %v247_v21 = vmul.f32 0.6931472, %v531_v17 }
  0x80   : > { %v259_v10 = vsel %vm257_vm0, %v529_v7, %v258_v9 }
  0x81   : > { %v260_v11 = vsub.f32 %v259_v10, %v237_v8  ;;  %v253_v24 = vsel %vm252_vm1, %v250_v22, %v247_v21 }
  0x82   : > { %v254_v25 = vadd.f32 %v253_v24, %v244_v23 }
  0x83   : > { %v427_v13 = vadd.f32 -1.0, %v260_v11 }
  0x85   : > { %v262_v14 = vmul.f32 19.96008, %v427_v13 }
  0x87   : > { %v263_v16 = vmul.f32 1.442695, %v262_v14 }
  0x89   : > { %532 = vpow2.f32 %v263_v16 }
  0x90   : > { %274 = sbr.rel (%p429_p8) target bundleno = 167 (0xa7), region = 44 }
  0x93   : > { %v533_v26 = vpop.eup %532 }
  0x94   : > { %v265_v27 = vsub.f32 1.0, %v533_v26 }
  0x96   : > { %v266_v28 = vmul.f32 %v265_v27, %v254_v25 }
  0x98   : > { %v276_v29 = vrot.slane %v266_v28, 4 }
  0x9a   : > { %v277_v30 = vadd.f32 %v276_v29, %v266_v28 }
  0x9c   : > { %v278_v31 = vrot.slane %v277_v30, 2 }
  0x9e   : > { %v279_v32 = vadd.f32 %v278_v31, %v277_v30 }
  0xa0   : > { %v280_v33 = vrot.slane %v279_v32, 1 }
  0xa2   : > { %v281_v35 = vadd.f32 %v280_v33, %v279_v32 }
  0xa4   : > { %v282_v36 = vadd.f32 %v281_v35, %v275_v34 }
  0xa6   : > { %283 = vst [vmem:[%s922_s12] sm:$0x1] %v282_v36 }
  0xa7 PF: > { %p430_p5 = scmp.le.s32.totalorder %s918_s19, 2048 }
  0xa8   : > { %v287_v37 = vlaneseq (!%p430_p5)  ;;  %v292_v39 = vstv (!%p430_p5), %s428_s27 }
  0xa9   : > { %286 = sbr.rel (%p430_p5) target bundleno = 195 (0xc3), region = 48 }
  0xaa   : > { %v288_v38 = vshrl.u32 (!%p430_p5), %v287_v37, 7  ;;  %v290_v40 = vand.u32 (!%p430_p5), 127, %v287_v37 }
  0xac   : > { %v291_v41 = vmul.u32 (!%p430_p5), 128, %v288_v38 }
  0xad   : > { %v295_v50 = vld [vmem:[%s922_s12] sm:$0x1] (!%p430_p5) }
  0xae   : > { %v293_v42 = vadd.s32 (!%p430_p5), %v292_v39, %v291_v41 }
  0xb0   : > { %v294_v43 = vadd.s32 %v293_v42, %v290_v40 }
  0xb2   : > { %vm296_vm2 = vcmp.lt.s32.totalorder %v294_v43, 2048 }
  0xb3   : > { %v297_v44 = vsel %vm296_vm2, %v266_v28, 0.0 }
  0xb4   : > { %v298_v45 = vrot.slane %v297_v44, 4 }
  0xb6   : > { %v299_v46 = vadd.f32 %v298_v45, %v297_v44 }
  0xb8   : > { %v300_v47 = vrot.slane %v299_v46, 2 }
  0xba   : > { %v301_v48 = vadd.f32 %v300_v47, %v299_v46 }
  0xbc   : > { %v302_v49 = vrot.slane %v301_v48, 1 }
  0xbe   : > { %v303_v51 = vadd.f32 %v302_v49, %v301_v48 }
  0xc0   : > { %v304_v52 = vadd.f32 %v303_v51, %v295_v50 }
  0xc2   : > { %305 = vst [vmem:[%s922_s12] sm:$0x1] %v304_v52 }
  0xc3 PF: > { %s431_s25 = sshll.u32 %s696_s15, 4  ;;  %s319_s22 = sshll.u32 %s922_s12, 4  ;;  %s320_s22 = int_to_ptr.vmem [resolvable:$true] %s319_s22 }
  0xc4   : > { %s937_s28 = scalar_lea.hbm %s993_s2, %s431_s25  ;;  %s307_s21 = scalar_lea.sflag [#allocation4], %s223_s24 }
  0xc5   : > { %s594_s26 = scalar_lea.vmem %s320_s22, 16  ;;  %p1008_p6 = scmp.ne.s32.totalorder %s999_s3, 0 }
  0xc6   : > { %p595_p13 = scmp.ne.s32.totalorder %s320_s22, %s594_s26  ;;  %s709_s6 = smov [#allocation7]  }
  0xc7   : > { %s598_s7 = sshll.u32 %s709_s6, 4  ;;  %s599_s7 = int_to_ptr.vmem [resolvable:$false] %s598_s7 }
  0xc8   : > { %p596_p0 = pnand %p595_p13, %p1008_p6  ;;  %s600_s8 = scalar_lea.vmem %s599_s7, 32 }
  0xc9   : > { %p601_p7 = scmp.lt.s32.totalorder %s320_s22, %s599_s7  ;;  %p602_p9 = scmp.lt.s32.totalorder %s600_s8, %s594_s26 }
  0xca   : > { %p597_p2 = pneg %p596_p0 }
  0xcb   : > { %p603_p1 = por %p602_p9, %p601_p7 }
  0xcd   : > { %p604_p3 = pnand %p603_p1, %p597_p2 }
  0xcf   : > { %607 = shalt.err (!%p604_p3)
}
  0xd0   : > { %s608_s15 = scalar_lea.hbm %s937_s28, 16  ;;  %s612_s27 = scalar_lea.hbm %s993_s2, 32 }
  0xd1   : > { %p609_p10 = scmp.ne.s32.totalorder %s937_s28, %s608_s15  ;;  %p613_p11 = scmp.lt.u32.totalorder %s937_s28, %s993_s2 }
  0xd2   : > { %p614_p8 = scmp.lt.u32.totalorder %s612_s27, %s608_s15  ;;  %p616_p13 = scmp.lt.u32.totalorder %s608_s15, %s937_s28 }
  0xd3   : > { %p610_p12 = pnand %p609_p10, %p1008_p6 }
  0xd4   : > { %p615_p5 = por %p614_p8, %p613_p11 }
  0xd5   : > { %p611_p4 = pneg %p610_p12 }
  0xd6   : > { %p617_p0 = por %p616_p13, %p615_p5 }
  0xd8   : > { %p618_p2 = pnand %p617_p0, %p611_p4 }
  0xda   : > { %621 = shalt.err (!%p618_p2)
}
  0xdb   : > { %438 = dma.vmem_to_hbm [thread:$0]  (%p1008_p6), %s320_s22, 16, %s937_s28, %s307_s21  }
  0xdc PF: > { %s331_s25 = sand.u32 1, %s672_s9   ;;  %p1009_p7 = scmp.ne.s32.totalorder %s1000_s4, 0 }
  0xdd   : > { %p1010_p9 = scmp.ge.s32.totalorder %s704_s17, 2  ;;  %s332_s18 = scalar_lea.sflag [#allocation4], %s331_s25 }
  0xdf   : > { %p448_p1 = pnand %p1010_p9, %p1009_p7 }
  0xe1   : > { %667 = dma.done.wait (!%p448_p1), %s332_s18, 16  }
  0xe2   : > { %669 = vsyncadd (!%p448_p1), %s332_s18, 4294967280  ;;  %s21_s17 = sadd.s32 1, %s704_s17   ;;  %s1011_s9 = smov %s676_s10 }
  0xe3   : > { %p18_p3 = scmp.ge.s32.totalorder %s21_s17, 4   ;;  %s1012_s10 = smov %s680_s11 }
  0xe4   : > { %s1013_s11 = smov %s797_s29  ;;  %s1014_s12 = smov %s688_s13 }
  0xe5   : > { %s1015_s13 = smov %s692_s14  ;;  %s1016_s14 = smov %s800_s30 }
  0xe6   : > { %s1017_s15 = smov %s700_s16  ;;  %s1018_s16 = smov %s1020_s20 }
  0xe7   :  { %20 = sbr.rel (!%p18_p3) target bundleno = 10 (0xa), region = 98 }
  0xee   :  { %336 = vsyncpa [#allocation3], 1 }
  0xef   :  { %338 = vsyncpa [#allocation3 + $0x1], 1 }
  0xf0   :  { %339 = vsyncpa [#allocation6], 1 }
  0xf1   :  { %341 = vsyncpa [#allocation6 + $0x1], 1 }
  0xf2   :  { %342 = vsyncpa [#allocation4], 1 }
  0xf3   :  { %344 = vsyncpa [#allocation4 + $0x1], 1 }

</bundles_post_ra>
